<compile_context>
chip_gen: v5e
topology: v5e:2x2
jax: 0.10.0
libtpu: 0.0.40
codegen_flags: <defaults>
</compile_context>

<pallas_src>
import numpy as np

import jax
import jax.numpy as jnp
from jax.experimental import pallas as pl
from jax.experimental.pallas import tpu as pltpu


def _round_up(x, m):
    return (x + m - 1) // m * m


# ---------------------------------------------------------------------------
# Kernel: one dense projection per (row-tile, col-tile):  out = x @ W + b
# bf16 operands, f32 accumulation on the MXU, cast on the final store.
# ---------------------------------------------------------------------------
def _patch_proj_kernel(x_ref, w_ref, b_ref, o_ref):
    acc = jnp.dot(x_ref[...], w_ref[...], preferred_element_type=jnp.float32)
    o_ref[...] = (acc + b_ref[...]).astype(o_ref.dtype)


# ---------------------------------------------------------------------------
# Tile selection under an explicit VMEM budget.
# ---------------------------------------------------------------------------
_VMEM_BUDGET = 24 * 1024 * 1024  # headroom under the 32 MiB scoped default (v7x: 64 MiB physical)


def _select_tiles(M, K, E, in_bytes, out_bytes):
    def vmem_bytes(tm, tn):
        # x and out are double-buffered by the Pallas pipeline; count the
        # (constant-index) weight/bias buffers conservatively at 2x as well.
        return (2 * tm * K * in_bytes          # x block
                + 2 * K * tn * in_bytes        # resident weight
                + 2 * tn * 4                   # resident bias (f32)
                + 2 * tm * tn * out_bytes)     # out block

    # Prefer a full-E (lane-dense, single j block) tile so weight, bias and
    # activations are each DMAed exactly once.
    tn = E
    if vmem_bytes(8, tn) > _VMEM_BUDGET:
        tn = None
        for f in range(2, max(E // 128, 1) + 1):
            cand = E // f
            if E % f == 0 and cand % 128 == 0 and vmem_bytes(8, cand) <= _VMEM_BUDGET:
                tn = cand
                break
        if tn is None:
            raise ValueError(
                f"patch-embed weight ({K}x{E}) exceeds the VMEM budget; a "
                "K-tiled accumulator fallback is needed for this configuration.")

    cands = [c for c in (1024, 512, 384, 256, 128, 64, 32, 16, 8)
             if vmem_bytes(c, tn) <= _VMEM_BUDGET]
    # Exact divisor with >= 2 row blocks (keeps both v7x TensorCores busy).
    for c in cands:
        if M % c == 0 and M // c >= 2:
            return c, tn, M
    # Exact divisor (single block).
    for c in cands:
        if M % c == 0:
            return c, tn, M
    # No clean divisor: pad rows up to the smallest tile that covers M (or the
    # largest fitting tile when M is bigger than all candidates).
    tm = next((c for c in reversed(cands) if c >= M), cands[0])
    return tm, tn, _round_up(M, tm)


# ---------------------------------------------------------------------------
# pallas_call wrapper for the projection.
# ---------------------------------------------------------------------------
def _patch_proj(patches, w, b, *, tm, tn, out_dtype):
    M, K = patches.shape
    K2, E = w.shape
    assert K == K2 and b.shape == (1, E)
    assert M % tm == 0 and E % tn == 0

    grid = (M // tm, E // tn)  # M outermost; j is a single block when tn == E

    return pl.pallas_call(
        _patch_proj_kernel,
        out_shape=jax.ShapeDtypeStruct((M, E), out_dtype),
        grid_spec=pltpu.PrefetchScalarGridSpec(
            num_scalar_prefetch=0,
            grid=grid,
            in_specs=[
                pl.BlockSpec((tm, K), lambda i, j: (i, 0)),   # x: read once
                pl.BlockSpec((K, tn), lambda i, j: (0, j)),   # W: resident (once when tn == E)
                pl.BlockSpec((1, tn), lambda i, j: (0, j)),   # bias: resident
            ],
            out_specs=pl.BlockSpec((tm, tn), lambda i, j: (i, j)),
        ),
        compiler_params=pltpu.CompilerParams(
            dimension_semantics=("parallel", "parallel"),
            vmem_limit_bytes=32 * 1024 * 1024,
        ),
    )(patches, w, b)


# ---------------------------------------------------------------------------
# Forward pass matching PyTorch PatchEmbedding.
# ---------------------------------------------------------------------------
def patch_embedding(x, w_conv, b_conv, patch_size, *, compute_dtype=jnp.bfloat16):
    """x: (B, C, H, W); w_conv: (E, C, P, P); b_conv: (E,) -> (B, n_patches, E)."""
    B, C, H, W = x.shape
    P = patch_size
    assert H == W and H % P == 0, (
        f"Input image size ({H}*{W}) doesn't match model / patch size.")
    Hp, Wp = H // P, W // P
    n_patches = Hp * Wp
    E = w_conv.shape[0]
    K = C * P * P
    M = B * n_patches
    out_dtype = x.dtype

    # im2col for non-overlapping patches (single wrapper-side layout pass; the
    # bf16 downcast is fused by XLA into its output write).
    patches = (
        x.reshape(B, C, Hp, P, Wp, P)
        .transpose(0, 2, 4, 1, 3, 5)            # (B, Hp, Wp, C, P, P)
        .reshape(M, K)
        .astype(compute_dtype)
    )
    # Conv weight (E, C, P, P) -> (K, E) with the same (c, ph, pw) K ordering.
    w = w_conv.reshape(E, K).T.astype(compute_dtype)
    b = b_conv.reshape(1, E).astype(jnp.float32)

    # Pad a large ragged contraction dim to a lane multiple (zeros are exact).
    Kp = _round_up(K, 128) if (K > 128 and K % 128 != 0) else K
    if Kp != K:
        patches = jnp.pad(patches, ((0, 0), (0, Kp - K)))
        w = jnp.pad(w, ((0, Kp - K), (0, 0)))

    tm, tn, Mp = _select_tiles(
        M, Kp, E,
        in_bytes=np.dtype(compute_dtype).itemsize,
        out_bytes=np.dtype(out_dtype).itemsize,
    )
    if Mp != M:
        patches = jnp.pad(patches, ((0, Mp - M), (0, 0)))

    out = _patch_proj(patches, w, b, tm=tm, tn=tn, out_dtype=out_dtype)
    if Mp != M:
        out = out[:M]
    return out.reshape(B, n_patches, E)


# ---------------------------------------------------------------------------
# Pure-JAX (conv) reference matching the PyTorch module exactly.
# ---------------------------------------------------------------------------
def reference(x, w_conv, b_conv, patch_size):
    y = jax.lax.conv_general_dilated(
        x, w_conv,
        window_strides=(patch_size, patch_size),
        padding="VALID",
        dimension_numbers=("NCHW", "OIHW", "NCHW"),
        precision=jax.lax.Precision.HIGHEST,
    )
    y = y + b_conv.reshape(1, -1, 1, 1)          # (B, E, Hp, Wp)
    Bb, E, Hp, Wp = y.shape
    return y.reshape(Bb, E, Hp * Wp).transpose(0, 2, 1)  # (B, n_patches, E)


if __name__ == "__main__":
    # Small shapes: img_size=16, patch_size=4, in_channels=4, embed_dim=32
    B, C, IMG, P, E = 2, 4, 16, 4, 32
    n_patches = (IMG // P) ** 2

    key = jax.random.PRNGKey(0)
    kx, kw, kb = jax.random.split(key, 3)

    x = jax.random.normal(kx, (B, C, IMG, IMG), jnp.float32)

    # nn.Conv2d-style uniform init bound.
    fan_in = C * P * P
    bound = 1.0 / (fan_in ** 0.5)
    w_conv = jax.random.uniform(kw, (E, C, P, P), jnp.float32, -bound, bound)
    b_conv = jax.random.uniform(kb, (E,), jnp.float32, -bound, bound)

    fwd = jax.jit(lambda xx, ww, bb: patch_embedding(xx, ww, bb, P))
    out = jax.block_until_ready(fwd(x, w_conv, b_conv))

    ref = reference(x, w_conv, b_conv, P)
    assert out.shape == (B, n_patches, E)
    # bf16 operands with f32 accumulation vs. the f32 conv reference: the
    # precision tradeoff is deliberate, so the tolerance is loosened.
    assert jnp.allclose(out, ref, atol=5e-2, rtol=5e-2), "mismatch vs reference"

    print("KERNEL_OK")
</pallas_src>

<mosaic_0001>
module attributes {stable_mosaic.version = 11 : i64} {
  func.func @_patch_proj_kernel(%arg0: i32, %arg1: i32, %arg2: memref<16x64xbf16, #tpu.memory_space<vmem>>, %arg3: memref<64x32xbf16, #tpu.memory_space<vmem>>, %arg4: memref<1x32xf32, #tpu.memory_space<vmem>>, %arg5: memref<16x32xf32, #tpu.memory_space<vmem>>) attributes {dimension_semantics = [#tpu.dimension_semantics<parallel>, #tpu.dimension_semantics<parallel>], iteration_bounds = array<i64: 2, 1>, scalar_prefetch = 0 : i64, scratch_operands = 0 : i64, tpu.core_type = #tpu.core_type<tc>, window_params = [{transform_indices = @transform_0, window_bounds = array<i64: 16, 64>}, {transform_indices = @transform_1, window_bounds = array<i64: 64, 32>}, {transform_indices = @transform_2, window_bounds = array<i64: 1, 32>}, {transform_indices = @transform_3, window_bounds = array<i64: 16, 32>}]} {
    %c0 = arith.constant 0 : index
    %c0_0 = arith.constant 0 : index
    %0 = vector.load %arg2[%c0, %c0_0] : memref<16x64xbf16, #tpu.memory_space<vmem>>, vector<16x64xbf16>
    %c0_1 = arith.constant 0 : index
    %c0_2 = arith.constant 0 : index
    %1 = vector.load %arg3[%c0_1, %c0_2] : memref<64x32xbf16, #tpu.memory_space<vmem>>, vector<64x32xbf16>
    %cst = arith.constant dense<0.000000e+00> : vector<16x32xf32>
    %2 = tpu.matmul %0, %1, %cst {dimension_numbers = #tpu.dot_dimension_numbers<[1], [0], [0], [1], [0, 0, 1, 1], [], []>} : vector<16x64xbf16>, vector<64x32xbf16>, vector<16x32xf32> -> vector<16x32xf32>
    %c0_3 = arith.constant 0 : index
    %c0_4 = arith.constant 0 : index
    %3 = vector.load %arg4[%c0_3, %c0_4] : memref<1x32xf32, #tpu.memory_space<vmem>>, vector<1x32xf32>
    %4 = vector.broadcast %3 : vector<1x32xf32> to vector<16x32xf32>
    %5 = arith.addf %2, %4 : vector<16x32xf32>
    %c0_5 = arith.constant 0 : index
    %c0_6 = arith.constant 0 : index
    %6 = vector.load %arg5[%c0_5, %c0_6] : memref<16x32xf32, #tpu.memory_space<vmem>>, vector<16x32xf32>
    tpu.vector_store %arg5[%c0_5, %c0_6], %5 {strides = array<i32>} : memref<16x32xf32, #tpu.memory_space<vmem>>, vector<16x32xf32>,
    return
  }
  func.func @transform_0(%arg0: i32, %arg1: i32) -> (i32, i32) {
    %c0_i32 = arith.constant 0 : i32
    %c0_i32_0 = arith.constant 0 : i32
    return %arg0, %c0_i32 : i32, i32
  }
  func.func @transform_1(%arg0: i32, %arg1: i32) -> (i32, i32) {
    %c0_i32 = arith.constant 0 : i32
    %c0_i32_0 = arith.constant 0 : i32
    return %c0_i32, %arg1 : i32, i32
  }
  func.func @transform_2(%arg0: i32, %arg1: i32) -> (i32, i32) {
    %c0_i32 = arith.constant 0 : i32
    %c0_i32_0 = arith.constant 0 : i32
    return %c0_i32, %arg1 : i32, i32
  }
  func.func @transform_3(%arg0: i32, %arg1: i32) -> (i32, i32) {
    %c0_i32 = arith.constant 0 : i32
    return %arg0, %arg1 : i32, i32
  }
}

</mosaic_0001>

<bundles_post_ra>
// kernel: _lambda_.1
= control target key start
LH: loop header
LB: loop body
LE: loop exit
PB: predicated region body
PF: predicated region fallthrough
CT: control target
= control target key end

     0   :  { %8 = vsyncpa [#allocation3], 0  ;;  %s711_s0 = inlined_call_operand.vmem [shape: bf16[32,64], index: 0, kind: input, shape index: {}]   ;;  %s712_s1 = inlined_call_operand.vmem [shape: bf16[64,32], index: 1, kind: input, shape index: {}]   ;;  %s713_s2 = inlined_call_operand.vmem [shape: f32[1,32], index: 2, kind: input, shape index: {}]   ;;  %s714_s3 = inlined_call_operand.hbm [shape: f32[32,32], index: 3, kind: output, shape index: {}]  }
   0x1   :  { %10 = vsyncpa [#allocation3 + $0x1], 0  ;;  %s600_s12 = smov 0   ;;  %s602_s13 = smov 0  }
   0x2   :  { %s604_s14 = smov 0   ;;  %s606_s15 = smov 0  }
   0x3   :  { %s608_s16 = smov 0   ;;  %s610_s17 = smov 0  }
   0x4 LB: > { %s398_s18 = sadd.s32 4294967295, %s576_s17   ;;  %s399_s19 = sadd.s32 4294967294, %s576_s17   ;;  %s576_s17 = sphi %s610_s17, %s16_s17   ;;  %s572_s16 = sphi %s608_s16, %s721_s16   ;;  %s568_s15 = sphi %s606_s15, %s720_s15   ;;  %s564_s14 = sphi %s604_s14, %s719_s14   ;;  %s560_s13 = sphi %s602_s13, %s718_s13   ;;  %s556_s12 = sphi %s600_s12, %s717_s12  }
   0x5   : > { %s28_s20 = sadd.s32 1, %s572_s16  ;;  %s115_s21 = sadd.s32 1, %s564_s14 }
   0x6   : > { %p30_p0 = scmp.ge.s32.totalorder %s28_s20, 2  ;;  %p125_p1 = scmp.ne.s32.totalorder %s564_s14, %s560_s13 }
   0x7   : > { %p126_p2 = scmp.eq.s32.totalorder %s398_s18, 1  ;;  %p131_p3 = scmp.ne.s32.totalorder %s560_s13, %s556_s12 }
   0x8   : > { %s723_s20 = smov (%p30_p0, %s28_s20), 0  ;;  %p132_p5 = scmp.eq.s32.totalorder %s399_s19, 1 }
   0x9   : > { %p640_p4 = por %p126_p2, %p125_p1  ;;  %s110_s23 = ssub.s32 %s572_s16, %s723_s20 }
   0xa   : > { %p404_p6 = scmp.ge.s32.totalorder %s576_s17, 1  ;;  %p113_p7 = scmp.eq.s32.totalorder %s110_s23, 0 }
   0xb   : > { %p647_p8 = por %p132_p5, %p131_p3  ;;  %p172_p9 = scmp.lt.s32.totalorder %s576_s17, 3 }
   0xc   : > { %s653_s25 = scalar_select %p113_p7, %s564_s14, %s115_s21  }
   0xd   : > { %p173_p10 = pnand %p404_p6, %p172_p9 }
   0xe   : > { %s406_s28 = sshll.u32 (!%p173_p10), %s568_s15, 1  ;;  %s200_s18 = sand.u32 (!%p173_p10), 1, %s560_s13  }
   0xf   : > { %176 = sbr.rel (%p173_p10) target bundleno = 176 (0xb0), region = 32  ;;  %p204_p11 = scmp.lt.s32.totalorder (!%p173_p10), %s406_s28, 3 }
  0x10   : > { %s405_s19 = sshll.u32 (!%p173_p10), %s200_s18, 4  ;;  %s439_s26 = sshll.u32 (!%p173_p10), %s568_s15, 4 }
  0x11   : > { %s295_s29 = scalar_lea.hbm (!%p173_p10), %s714_s3, %s439_s26  ;;  %s202_s30 = scalar_lea.vmem (!%p173_p10), [#allocation2], %s405_s19 }
  0x12   : > { %s296_s4 = sshll.u32 (!%p173_p10), %s202_s30, 4  ;;  %s298_s5 = sshll.u32 (!%p173_p10), %s295_s29, 4  ;;  %s297_s4 = int_to_ptr.vmem [resolvable:$true] %s296_s4  ;;  %s299_s5 = int_to_ptr.hbm [resolvable:$true] %s298_s5 }
  0x13   : > { %s512_s7 = sshra.s32 (!%p173_p10), %s299_s5, 4  ;;  %s518_s10 = scalar_lea.hbm (!%p173_p10), %s714_s3, 32  ;;  %s513_s7 = int_to_ptr.hbm [resolvable:$true] %s512_s7 }
  0x14   : > { %v438_v0 = vld [vmem:[%s712_s1 + $0x18] sm:$0xff]  ;;  %v437_v1 = vld [vmem:[%s712_s1 + $0x10] sm:$0xff]  ;;  %s725_s28 = smov (!%p204_p11, %s406_s28), 3  ;;  %v436_v2 = vld [vmem:[%s712_s1 + $0x8] sm:$0xff]  ;;  %vm261_vm0 = vcmask 523264   ;;  %vm279_vm1 = vcmask 261120   ;;  %p519_p1 = scmp.lt.s32.totalorder %s513_s7, %s714_s3 }
  0x15   : > { %269 = vmatpush.bf16.msra.mxu0 %v438_v0  ;;  %s407_s6 = sshll.u32 %s725_s28, 2  ;;  %v435_v3 = vld [vmem:[%s712_s1] sm:$0xff]  ;;  %s514_s15 = scalar_lea.hbm %s513_s7, 16 }
  0x16   : > { %s207_s11 = scalar_lea.vmem %s711_s0, %s407_s6  ;;  %v497_v5 = vld [vmem:[%s713_s2] ss:$0 sm:$0xff]  ;;  %s283_s6 = scalar_lea.sflag [#allocation3], %s200_s18 }
  0x17   : > { %v434_v4 = vld [vmem:[%s207_s11] sm:$0xff]  ;;  %p515_p12 = scmp.ne.s32.totalorder %s513_s7, %s514_s15  ;;  %p520_p2 = scmp.lt.s32.totalorder %s518_s10, %s514_s15 }
  0x19   : > { %270 = vmatpush.bf16.msra.mxu0 %v437_v1  ;;  %p516_p13 = pnand %p515_p12, %p640_p4  ;;  %p521_p3 = por %p520_p2, %p519_p1 }
  0x1b   : > { %p517_p0 = pneg %p516_p13 }
  0x1d   : > { %271 = vmatpush.bf16.msra.mxu0 %v436_v2  ;;  %p522_p5 = pnand %p521_p3, %p517_p0 }
  0x21   : > { %272 = vmatpush.bf16.msra.mxu0 %v435_v3 }
  0x24   : > { %428 = vmatmul.msk.bf16.vlgmr.msra.gmra.mxu0 %vm261_vm0, %v434_v4 }
  0xa1   : > { %v274_v6 = vpop.f32.mrf.mxu0 }
  0xa2   : > { %v275_v7 = vadd.f32 %v497_v5, %v274_v6 }
  0xa4   : > { %280 = vst.msk [vmem:[%s202_s30] sm:$0xff] %vm279_vm1, %v275_v7 }
  0xa9   : > { %v276_v8 = vpop.f32.mrf.mxu0 }
  0xaa   : > { %v277_v9 = vadd.f32 %v497_v5, %v276_v8 }
  0xac   : > { %281 = vst.msk [vmem:[%s202_s30 + $0x8] sm:$0xff] %vm279_vm1, %v277_v9 }
  0xad   : > { %525 = shalt.err (!%p522_p5)
}
  0xae   : > { %s578_s18 = smov 128   ;;  %s579_s21 = smov 8  }
  0xaf   : > { %440 = dma.vmem_to_hbm [thread:$0]  (%p640_p4), %s297_s4, 256, %s299_s5, %s283_s6, %s578_s18, %s578_s18, %s579_s21  }
  0xb0 PF: > { %p446_p6 = scmp.ge.s32.totalorder %s576_s17, 2  ;;  %s313_s23 = sand.u32 1, %s556_s12  }
  0xb1   : > { %s314_s26 = scalar_lea.sflag [#allocation3], %s313_s23 }
  0xb2   : > { %p443_p7 = pnand %p446_p6, %p647_p8 }
  0xb4   : > { %p444_p9 = pneg %p443_p7 }
  0xb6   : > { %551 = dma.done.wait (%p444_p9), %s314_s26, 256  }
  0xb7   : > { %553 = vsyncadd (%p444_p9), %s314_s26, 4294967040  ;;  %s16_s17 = sadd.s32 1, %s576_s17   ;;  %s717_s12 = smov %s560_s13 }
  0xb8   : > { %p13_p10 = scmp.ge.s32.totalorder %s16_s17, 4   ;;  %s718_s13 = smov %s564_s14 }
  0xb9   : > { %s719_s14 = smov %s653_s25  ;;  %s720_s15 = smov %s572_s16 }
  0xba   : > { %s721_s16 = smov %s723_s20  ;;  %15 = sbr.rel (!%p13_p10) target bundleno = 4 (0x4), region = 73 }
  0xbf   :  { %320 = vsyncpa [#allocation3], 1 }
  0xc0   :  { %322 = vsyncpa [#allocation3 + $0x1], 1 }

</bundles_post_ra>
